<compile_context>
chip_gen: v6e
topology: v6e:2x2x1
jax: 0.10.0
libtpu: 0.0.40
codegen_flags: <defaults>
</compile_context>

<pallas_src>
import functools

import jax
import jax.numpy as jnp
import numpy as np
from jax import lax
from jax.experimental import pallas as pl
from jax.experimental.pallas import tpu as pltpu


def _pairwise_hinge_kernel(o_ref, l_ref, loss_out_ref, cnt_out_ref,
                           loss_acc, cnt_acc, *, margin, S, Kt, Kc):
    """One (S, S, Kt) block of slices; the slice (K) axis sits on lanes.

    Computes only the off-diagonal (j != l) hinge terms and the argmax-match
    count for every slice in the block (including zero padding); diagonal and
    padding corrections are applied analytically in the wrapper.
    """
    kb = pl.program_id(1)                     # reduction ("arbitrary") axis
    nkb = pl.num_programs(1)

    @pl.when(kb == 0)
    def _init():
        loss_acc[...] = jnp.zeros_like(loss_acc)
        cnt_acc[...] = jnp.zeros_like(cnt_acc)

    m = jnp.float32(margin)
    loss_sum = jnp.float32(0.0)
    cnt_sum = jnp.int32(0)

    # Static lane-chunk loop: per-chunk operands / accumulator stay resident
    # (only two scalars are carried across chunk iterations).
    for c0 in range(0, Kt, Kc):
        kc = min(Kc, Kt - c0)
        o = o_ref[:, :, c0:c0 + kc]           # (S, S, kc) f32
        lab = l_ref[:, :, c0:c0 + kc]

        def hinge_pass(d, o=o, lab=lab):
            # pair column l with column (l +/- d) mod S: sublane rotate -> XLU slot
            t1 = o - pltpu.roll(o, d, 1)
            t2 = lab - pltpu.roll(lab, d, 1)
            return jnp.maximum(m - t1 * t2, 0.0)

        # offsets d and S-d generate mirrored (equal-valued) ordered pairs,
        # so passes 1..(S-1)//2 are doubled; the d = S/2 pass (S even) already
        # contains both orderings of each pair and is added once.
        half = jnp.zeros((S, S, kc), jnp.float32)
        for d in range(1, (S - 1) // 2 + 1):
            half = half + hinge_pass(d)
        chunk_loss = 2.0 * jnp.sum(half)
        if S % 2 == 0 and S > 1:
            chunk_loss = chunk_loss + jnp.sum(hinge_pass(S // 2))
        loss_sum = loss_sum + chunk_loss

        # flat accuracy: first-occurrence argmax along dim 1, per (row, slice)
        idx = lax.broadcasted_iota(jnp.int32, (S, S, kc), 1)
        arg_o = jnp.min(
            jnp.where(o == jnp.max(o, axis=1, keepdims=True), idx, S), axis=1)
        arg_l = jnp.min(
            jnp.where(lab == jnp.max(lab, axis=1, keepdims=True), idx, S), axis=1)
        cnt_sum = cnt_sum + jnp.sum((arg_o == arg_l).astype(jnp.int32))

    # accumulate in scratch; tiny outputs are written only on the last step
    loss_acc[...] += loss_sum
    cnt_acc[...] += cnt_sum

    @pl.when(kb == nkb - 1)
    def _finish():
        loss_out_ref[0] = loss_acc[...]
        cnt_out_ref[0] = cnt_acc[...]


def _tpu_num_cores():
    """2-way grid split only where it helps: v7x has 2 TensorCores/chip."""
    try:
        kind = jax.devices()[0].device_kind.lower()
    except Exception:
        return 1
    return 2 if "v7" in kind else 1


def pairwise_max_margin_hinge_loss(out_matrix, label_matrix, margin, sample_num,
                                   *, num_cores=None):
    """out_matrix, label_matrix: (S, S, K) float32 (PyTorch layout).
    Returns (loss: f32 scalar, correction_num: i32 scalar)."""
    S = int(sample_num)
    assert out_matrix.shape[0] == S and out_matrix.shape[1] == S
    K = int(out_matrix.shape[2])

    o = out_matrix.astype(jnp.float32)
    lab = label_matrix.astype(jnp.float32)

    if num_cores is None:
        num_cores = _tpu_num_cores()

    # Block sizing: double-buffered inputs cost 2 arrays x 2 bufs x S*S*Kt*4 B.
    # Keep that under ~8 MiB; in-kernel temporaries are now per-chunk (Kc lanes)
    # and small, so an explicit 32 MiB scoped-VMEM limit is safe on v5e/v6e/v7x.
    per_slice_bytes = S * S * 4
    budget_bytes = 8 * 1024 * 1024
    kt_cap = max(128, (budget_bytes // (4 * per_slice_bytes)) // 128 * 128)

    if K <= kt_cap:
        # block dim == full array dim is always legal -> no padding needed
        Kt, nc, nkb = K, 1, 1
    else:
        Kt = kt_cap                                  # lane-aligned
        nkb_total = pl.cdiv(K, Kt)
        nc = num_cores if nkb_total >= num_cores else 1
        nkb = pl.cdiv(nkb_total, nc)

    k_pad_total = nc * nkb * Kt
    pad = k_pad_total - K
    if pad:
        o = jnp.pad(o, ((0, 0), (0, 0), (0, pad)))
        lab = jnp.pad(lab, ((0, 0), (0, 0), (0, pad)))

    Kc = min(Kt, 256)                                # lane chunk per inner step

    kernel = functools.partial(_pairwise_hinge_kernel,
                               margin=float(margin), S=S, Kt=Kt, Kc=Kc)

    in_map = lambda c, kb: (0, 0, c * nkb + kb)
    out_map = lambda c, kb: (c, 0, 0)

    loss_parts, cnt_parts = pl.pallas_call(
        kernel,
        out_shape=(
            jax.ShapeDtypeStruct((nc, 1, 1), jnp.float32),
            jax.ShapeDtypeStruct((nc, 1, 1), jnp.int32),
        ),
        grid_spec=pltpu.PrefetchScalarGridSpec(
            num_scalar_prefetch=0,
            grid=(nc, nkb),
            in_specs=[
                pl.BlockSpec((S, S, Kt), in_map),
                pl.BlockSpec((S, S, Kt), in_map),
            ],
            out_specs=(
                pl.BlockSpec((1, 1, 1), out_map),
                pl.BlockSpec((1, 1, 1), out_map),
            ),
            scratch_shapes=[
                pltpu.VMEM((1, 1), jnp.float32),
                pltpu.VMEM((1, 1), jnp.int32),
            ],
        ),
        compiler_params=pltpu.CompilerParams(
            dimension_semantics=("parallel", "arbitrary"),
            vmem_limit_bytes=32 * 1024 * 1024),
    )(o, lab)

    # Analytic corrections (exact, applied once outside the kernel):
    #  * diagonal (j == l) terms: relu(margin - 0) for every (i, j, real slice)
    #  * zero-padded slices contribute S*S*(S-1)*relu(margin) off-diagonal loss
    #    and S matching argmax rows each.
    m_relu = max(float(margin), 0.0)
    loss = (jnp.sum(loss_parts)
            + jnp.float32(K * S * S * m_relu)
            - jnp.float32(pad * S * S * (S - 1) * m_relu))
    cnt = jnp.sum(cnt_parts) - jnp.int32(pad * S)
    return loss, cnt


def _reference(out_matrix, label_matrix, margin, sample_num):
    """Pure-numpy reference mirroring the PyTorch loops."""
    o = np.asarray(out_matrix, dtype=np.float64)
    lab = np.asarray(label_matrix, dtype=np.float64)
    K = o.shape[2]
    loss = 0.0
    count = 0
    for k in range(K):
        ok = o[:, :, k]
        lk = lab[:, :, k]
        count += int(np.sum(np.argmax(ok, 1) == np.argmax(lk, 1)))
        d_o = ok[:, :, None] - ok[:, None, :]
        d_l = lk[:, :, None] - lk[:, None, :]
        loss += float(np.sum(np.maximum(margin - d_o * d_l, 0.0)))
    return loss, count


if __name__ == "__main__":
    # module has no parameters; just build deterministic inputs
    S = 8          # sample_num
    K = 4          # number of slices along dim=2
    margin = 1.0

    key = jax.random.PRNGKey(0)
    k1, k2 = jax.random.split(key)
    out_matrix = jax.random.normal(k1, (S, S, K), dtype=jnp.float32)
    label_matrix = jax.random.normal(k2, (S, S, K), dtype=jnp.float32)

    loss, count = pairwise_max_margin_hinge_loss(out_matrix, label_matrix, margin, S)
    loss = jax.block_until_ready(loss)
    count = jax.block_until_ready(count)

    ref_loss, ref_count = _reference(out_matrix, label_matrix, margin, S)
    assert int(count) == ref_count, (int(count), ref_count)
    assert abs(float(loss) - ref_loss) <= 1e-3 + 1e-5 * abs(ref_loss), (float(loss), ref_loss)

    print("KERNEL_OK")
</pallas_src>

<mosaic_0001>
module attributes {stable_mosaic.version = 11 : i64} {
  func.func @_pairwise_hinge_kernel(%arg0: i32, %arg1: i32, %arg2: memref<8x8x4xf32, #tpu.memory_space<vmem>>, %arg3: memref<8x8x4xf32, #tpu.memory_space<vmem>>, %arg4: memref<1x1x1xf32, #tpu.memory_space<vmem>>, %arg5: memref<1x1x1xi32, #tpu.memory_space<vmem>>, %arg6: memref<1x1xf32, #tpu.memory_space<vmem>>, %arg7: memref<1x1xi32, #tpu.memory_space<vmem>>) attributes {dimension_semantics = [#tpu.dimension_semantics<parallel>, #tpu.dimension_semantics<arbitrary>], iteration_bounds = array<i64: 1, 1>, scalar_prefetch = 0 : i64, scratch_operands = 2 : i64, tpu.core_type = #tpu.core_type<tc>, window_params = [{transform_indices = @transform_0, window_bounds = array<i64: 8, 8, 4>}, {transform_indices = @transform_1, window_bounds = array<i64: 8, 8, 4>}, {transform_indices = @transform_2, window_bounds = array<i64: 1, 1, 1>}, {transform_indices = @transform_3, window_bounds = array<i64: 1, 1, 1>}]} {
    %c0_i32 = arith.constant 0 : i32
    %0 = arith.cmpi eq, %arg1, %c0_i32 : i32
    %1 = arith.extui %0 : i1 to i32
    %c0_i32_0 = arith.constant 0 : i32
    %2 = arith.cmpi ne, %1, %c0_i32_0 : i32
    scf.if %2 {
      %cst_39 = arith.constant 0.000000e+00 : f32
      %89 = vector.broadcast %cst_39 : f32 to vector<1x1xf32>
      %c0_40 = arith.constant 0 : index
      %c0_41 = arith.constant 0 : index
      %90 = vector.load %arg6[%c0_40, %c0_41] : memref<1x1xf32, #tpu.memory_space<vmem>>, vector<1x1xf32>
      tpu.vector_store %arg6[%c0_40, %c0_41], %89 {strides = array<i32>} : memref<1x1xf32, #tpu.memory_space<vmem>>, vector<1x1xf32>,
      %c0_i32_42 = arith.constant 0 : i32
      %91 = vector.broadcast %c0_i32_42 : i32 to vector<1x1xi32>
      %c0_43 = arith.constant 0 : index
      %c0_44 = arith.constant 0 : index
      %92 = vector.load %arg7[%c0_43, %c0_44] : memref<1x1xi32, #tpu.memory_space<vmem>>, vector<1x1xi32>
      tpu.vector_store %arg7[%c0_43, %c0_44], %91 {strides = array<i32>} : memref<1x1xi32, #tpu.memory_space<vmem>>, vector<1x1xi32>,
    } else {
    }
    %c0 = arith.constant 0 : index
    %c0_1 = arith.constant 0 : index
    %c0_2 = arith.constant 0 : index
    %3 = vector.load %arg2[%c0, %c0_1, %c0_2] : memref<8x8x4xf32, #tpu.memory_space<vmem>>, vector<8x8x4xf32>
    %c0_3 = arith.constant 0 : index
    %c0_4 = arith.constant 0 : index
    %c0_5 = arith.constant 0 : index
    %4 = vector.load %arg3[%c0_3, %c0_4, %c0_5] : memref<8x8x4xf32, #tpu.memory_space<vmem>>, vector<8x8x4xf32>
    %cst = arith.constant 0.000000e+00 : f32
    %5 = vector.broadcast %cst : f32 to vector<8x8x4xf32>
    %c1_i32 = arith.constant 1 : i32
    %6 = tpu.dynamic_rotate %3 by %c1_i32 dim 1 : vector<8x8x4xf32>, i32 -> vector<8x8x4xf32>
    %7 = arith.subf %3, %6 : vector<8x8x4xf32>
    %c1_i32_6 = arith.constant 1 : i32
    %8 = tpu.dynamic_rotate %4 by %c1_i32_6 dim 1 : vector<8x8x4xf32>, i32 -> vector<8x8x4xf32>
    %9 = arith.subf %4, %8 : vector<8x8x4xf32>
    %10 = arith.mulf %7, %9 : vector<8x8x4xf32>
    %cst_7 = arith.constant 1.000000e+00 : f32
    %11 = vector.broadcast %cst_7 : f32 to vector<8x8x4xf32>
    %12 = arith.subf %11, %10 : vector<8x8x4xf32>
    %cst_8 = arith.constant 0.000000e+00 : f32
    %13 = vector.broadcast %cst_8 : f32 to vector<8x8x4xf32>
    %14 = arith.maximumf %12, %13 : vector<8x8x4xf32>
    %15 = arith.addf %5, %14 : vector<8x8x4xf32>
    %c2_i32 = arith.constant 2 : i32
    %16 = tpu.dynamic_rotate %3 by %c2_i32 dim 1 : vector<8x8x4xf32>, i32 -> vector<8x8x4xf32>
    %17 = arith.subf %3, %16 : vector<8x8x4xf32>
    %c2_i32_9 = arith.constant 2 : i32
    %18 = tpu.dynamic_rotate %4 by %c2_i32_9 dim 1 : vector<8x8x4xf32>, i32 -> vector<8x8x4xf32>
    %19 = arith.subf %4, %18 : vector<8x8x4xf32>
    %20 = arith.mulf %17, %19 : vector<8x8x4xf32>
    %cst_10 = arith.constant 1.000000e+00 : f32
    %21 = vector.broadcast %cst_10 : f32 to vector<8x8x4xf32>
    %22 = arith.subf %21, %20 : vector<8x8x4xf32>
    %cst_11 = arith.constant 0.000000e+00 : f32
    %23 = vector.broadcast %cst_11 : f32 to vector<8x8x4xf32>
    %24 = arith.maximumf %22, %23 : vector<8x8x4xf32>
    %25 = arith.addf %15, %24 : vector<8x8x4xf32>
    %c3_i32 = arith.constant 3 : i32
    %26 = tpu.dynamic_rotate %3 by %c3_i32 dim 1 : vector<8x8x4xf32>, i32 -> vector<8x8x4xf32>
    %27 = arith.subf %3, %26 : vector<8x8x4xf32>
    %c3_i32_12 = arith.constant 3 : i32
    %28 = tpu.dynamic_rotate %4 by %c3_i32_12 dim 1 : vector<8x8x4xf32>, i32 -> vector<8x8x4xf32>
    %29 = arith.subf %4, %28 : vector<8x8x4xf32>
    %30 = arith.mulf %27, %29 : vector<8x8x4xf32>
    %cst_13 = arith.constant 1.000000e+00 : f32
    %31 = vector.broadcast %cst_13 : f32 to vector<8x8x4xf32>
    %32 = arith.subf %31, %30 : vector<8x8x4xf32>
    %cst_14 = arith.constant 0.000000e+00 : f32
    %33 = vector.broadcast %cst_14 : f32 to vector<8x8x4xf32>
    %34 = arith.maximumf %32, %33 : vector<8x8x4xf32>
    %35 = arith.addf %25, %34 : vector<8x8x4xf32>
    %36 = vector.shape_cast %35 : vector<8x8x4xf32> to vector<1x8x8x4xf32>
    %cst_15 = arith.constant dense<0.000000e+00> : vector<1xf32>
    %37 = vector.multi_reduction <add>, %36, %cst_15 [1, 2, 3] : vector<1x8x8x4xf32> to vector<1xf32>
    %38 = vector.shape_cast %37 : vector<1xf32> to vector<1x1x1x1xf32>
    %39 = vector.extract %38[0, 0, 0, 0] : f32 from vector<1x1x1x1xf32>
    %cst_16 = arith.constant 2.000000e+00 : f32
    %40 = arith.mulf %cst_16, %39 : f32
    %c4_i32 = arith.constant 4 : i32
    %41 = tpu.dynamic_rotate %3 by %c4_i32 dim 1 : vector<8x8x4xf32>, i32 -> vector<8x8x4xf32>
    %42 = arith.subf %3, %41 : vector<8x8x4xf32>
    %c4_i32_17 = arith.constant 4 : i32
    %43 = tpu.dynamic_rotate %4 by %c4_i32_17 dim 1 : vector<8x8x4xf32>, i32 -> vector<8x8x4xf32>
    %44 = arith.subf %4, %43 : vector<8x8x4xf32>
    %45 = arith.mulf %42, %44 : vector<8x8x4xf32>
    %cst_18 = arith.constant 1.000000e+00 : f32
    %46 = vector.broadcast %cst_18 : f32 to vector<8x8x4xf32>
    %47 = arith.subf %46, %45 : vector<8x8x4xf32>
    %cst_19 = arith.constant 0.000000e+00 : f32
    %48 = vector.broadcast %cst_19 : f32 to vector<8x8x4xf32>
    %49 = arith.maximumf %47, %48 : vector<8x8x4xf32>
    %50 = vector.shape_cast %49 : vector<8x8x4xf32> to vector<1x8x8x4xf32>
    %cst_20 = arith.constant dense<0.000000e+00> : vector<1xf32>
    %51 = vector.multi_reduction <add>, %50, %cst_20 [1, 2, 3] : vector<1x8x8x4xf32> to vector<1xf32>
    %52 = vector.shape_cast %51 : vector<1xf32> to vector<1x1x1x1xf32>
    %53 = vector.extract %52[0, 0, 0, 0] : f32 from vector<1x1x1x1xf32>
    %54 = arith.addf %40, %53 : f32
    %cst_21 = arith.constant 0.000000e+00 : f32
    %55 = arith.addf %cst_21, %54 : f32
    %56 = tpu.iota {dimensions = array<i32: 1>} : vector<8x8x4xi32>
    %cst_22 = arith.constant dense<0xFF800000> : vector<8x4xf32>
    %57 = vector.multi_reduction <maximumf>, %3, %cst_22 [1] : vector<8x8x4xf32> to vector<8x4xf32>
    %58 = vector.shape_cast %57 : vector<8x4xf32> to vector<8x1x4xf32>
    %59 = vector.broadcast %58 : vector<8x1x4xf32> to vector<8x8x4xf32>
    %60 = arith.cmpf oeq, %3, %59 : vector<8x8x4xf32>
    %c8_i32 = arith.constant 8 : i32
    %61 = vector.broadcast %c8_i32 : i32 to vector<8x8x4xi32>
    %62 = arith.select %60, %56, %61 : vector<8x8x4xi1>, vector<8x8x4xi32>
    %cst_23 = arith.constant dense<2147483647> : vector<8x4xi32>
    %63 = vector.multi_reduction <minsi>, %62, %cst_23 [1] : vector<8x8x4xi32> to vector<8x4xi32>
    %cst_24 = arith.constant dense<0xFF800000> : vector<8x4xf32>
    %64 = vector.multi_reduction <maximumf>, %4, %cst_24 [1] : vector<8x8x4xf32> to vector<8x4xf32>
    %65 = vector.shape_cast %64 : vector<8x4xf32> to vector<8x1x4xf32>
    %66 = vector.broadcast %65 : vector<8x1x4xf32> to vector<8x8x4xf32>
    %67 = arith.cmpf oeq, %4, %66 : vector<8x8x4xf32>
    %c8_i32_25 = arith.constant 8 : i32
    %68 = vector.broadcast %c8_i32_25 : i32 to vector<8x8x4xi32>
    %69 = arith.select %67, %56, %68 : vector<8x8x4xi1>, vector<8x8x4xi32>
    %cst_26 = arith.constant dense<2147483647> : vector<8x4xi32>
    %70 = vector.multi_reduction <minsi>, %69, %cst_26 [1] : vector<8x8x4xi32> to vector<8x4xi32>
    %71 = arith.cmpi eq, %63, %70 : vector<8x4xi32>
    %72 = arith.extui %71 : vector<8x4xi1> to vector<8x4xi32>
    %73 = vector.shape_cast %72 : vector<8x4xi32> to vector<1x8x4xi32>
    %cst_27 = arith.constant dense<0> : vector<1xi32>
    %74 = vector.multi_reduction <add>, %73, %cst_27 [1, 2] : vector<1x8x4xi32> to vector<1xi32>
    %75 = vector.shape_cast %74 : vector<1xi32> to vector<1x1x1xi32>
    %76 = vector.extract %75[0, 0, 0] : i32 from vector<1x1x1xi32>
    %c0_i32_28 = arith.constant 0 : i32
    %77 = arith.addi %c0_i32_28, %76 : i32
    %c0_29 = arith.constant 0 : index
    %c0_30 = arith.constant 0 : index
    %78 = vector.load %arg6[%c0_29, %c0_30] : memref<1x1xf32, #tpu.memory_space<vmem>>, vector<1x1xf32>
    %79 = vector.broadcast %55 : f32 to vector<1x1xf32>
    %80 = arith.addf %78, %79 : vector<1x1xf32>
    %c0_31 = arith.constant 0 : index
    %c0_32 = arith.constant 0 : index
    %81 = vector.load %arg6[%c0_31, %c0_32] : memref<1x1xf32, #tpu.memory_space<vmem>>, vector<1x1xf32>
    tpu.vector_store %arg6[%c0_31, %c0_32], %80 {strides = array<i32>} : memref<1x1xf32, #tpu.memory_space<vmem>>, vector<1x1xf32>,
    %c0_33 = arith.constant 0 : index
    %c0_34 = arith.constant 0 : index
    %82 = vector.load %arg7[%c0_33, %c0_34] : memref<1x1xi32, #tpu.memory_space<vmem>>, vector<1x1xi32>
    %83 = vector.broadcast %77 : i32 to vector<1x1xi32>
    %84 = arith.addi %82, %83 : vector<1x1xi32>
    %c0_35 = arith.constant 0 : index
    %c0_36 = arith.constant 0 : index
    %85 = vector.load %arg7[%c0_35, %c0_36] : memref<1x1xi32, #tpu.memory_space<vmem>>, vector<1x1xi32>
    tpu.vector_store %arg7[%c0_35, %c0_36], %84 {strides = array<i32>} : memref<1x1xi32, #tpu.memory_space<vmem>>, vector<1x1xi32>,
    %c0_i32_37 = arith.constant 0 : i32
    %86 = arith.cmpi eq, %arg1, %c0_i32_37 : i32
    %87 = arith.extui %86 : i1 to i32
    %c0_i32_38 = arith.constant 0 : i32
    %88 = arith.cmpi ne, %87, %c0_i32_38 : i32
    scf.if %88 {
      %c0_39 = arith.constant 0 : index
      %c0_40 = arith.constant 0 : index
      %89 = vector.load %arg6[%c0_39, %c0_40] : memref<1x1xf32, #tpu.memory_space<vmem>>, vector<1x1xf32>
      %c0_41 = arith.constant 0 : index
      %c0_42 = arith.constant 0 : index
      %c0_43 = arith.constant 0 : index
      %90 = vector.load %arg4[%c0_41, %c0_42, %c0_43] : memref<1x1x1xf32, #tpu.memory_space<vmem>>, vector<1x1x1xf32>
      %91 = vector.shape_cast %90 : vector<1x1x1xf32> to vector<1x1xf32>
      %92 = vector.shape_cast %89 : vector<1x1xf32> to vector<1x1x1xf32>
      tpu.vector_store %arg4[%c0_41, %c0_42, %c0_43], %92 {strides = array<i32>} : memref<1x1x1xf32, #tpu.memory_space<vmem>>, vector<1x1x1xf32>,
      %c0_44 = arith.constant 0 : index
      %c0_45 = arith.constant 0 : index
      %93 = vector.load %arg7[%c0_44, %c0_45] : memref<1x1xi32, #tpu.memory_space<vmem>>, vector<1x1xi32>
      %c0_46 = arith.constant 0 : index
      %c0_47 = arith.constant 0 : index
      %c0_48 = arith.constant 0 : index
      %94 = vector.load %arg5[%c0_46, %c0_47, %c0_48] : memref<1x1x1xi32, #tpu.memory_space<vmem>>, vector<1x1x1xi32>
      %95 = vector.shape_cast %94 : vector<1x1x1xi32> to vector<1x1xi32>
      %96 = vector.shape_cast %93 : vector<1x1xi32> to vector<1x1x1xi32>
      tpu.vector_store %arg5[%c0_46, %c0_47, %c0_48], %96 {strides = array<i32>} : memref<1x1x1xi32, #tpu.memory_space<vmem>>, vector<1x1x1xi32>,
    } else {
    }
    return
  }
  func.func @transform_0(%arg0: i32, %arg1: i32) -> (i32, i32, i32) {
    %c1_i32 = arith.constant 1 : i32
    %0 = arith.muli %arg0, %c1_i32 : i32
    %1 = arith.addi %0, %arg1 : i32
    %c0_i32 = arith.constant 0 : i32
    %c0_i32_0 = arith.constant 0 : i32
    %c0_i32_1 = arith.constant 0 : i32
    return %c0_i32, %c0_i32_0, %1 : i32, i32, i32
  }
  func.func @transform_1(%arg0: i32, %arg1: i32) -> (i32, i32, i32) {
    %c1_i32 = arith.constant 1 : i32
    %0 = arith.muli %arg0, %c1_i32 : i32
    %1 = arith.addi %0, %arg1 : i32
    %c0_i32 = arith.constant 0 : i32
    %c0_i32_0 = arith.constant 0 : i32
    %c0_i32_1 = arith.constant 0 : i32
    return %c0_i32, %c0_i32_0, %1 : i32, i32, i32
  }
  func.func @transform_2(%arg0: i32, %arg1: i32) -> (i32, i32, i32) {
    %c0_i32 = arith.constant 0 : i32
    %c0_i32_0 = arith.constant 0 : i32
    %c0_i32_1 = arith.constant 0 : i32
    return %arg0, %c0_i32, %c0_i32_0 : i32, i32, i32
  }
  func.func @transform_3(%arg0: i32, %arg1: i32) -> (i32, i32, i32) {
    %c0_i32 = arith.constant 0 : i32
    %c0_i32_0 = arith.constant 0 : i32
    %c0_i32_1 = arith.constant 0 : i32
    return %arg0, %c0_i32, %c0_i32_0 : i32, i32, i32
  }
}

</mosaic_0001>

<bundles_post_ra>
// kernel: tpu_custom_call.1
= control target key start
LH: loop header
LB: loop body
LE: loop exit
PB: predicated region body
PF: predicated region fallthrough
CT: control target
= control target key end

     0   :  { %9 = vsyncpa [#allocation5], 0  ;;  %v372_v15 = vlaneseq  ;;  %s1259_s0 = inlined_call_operand.vmem [shape: f32[8,8,4], index: 0, kind: input, shape index: {}]   ;;  %s1260_s1 = inlined_call_operand.vmem [shape: f32[8,8,4], index: 1, kind: input, shape index: {}]   ;;  %s1261_s2 = inlined_call_operand.hbm [shape: f32[1,1,1], index: 2, kind: output, shape index: {0}]   ;;  %s1262_s3 = inlined_call_operand.hbm [shape: s32[1,1,1], index: 3, kind: output, shape index: {1}]  }
   0x1   :  { %v859_v0 = vld [vmem:[%s1259_s0] sm:$0xff]  ;;  %v864_v1 = vld [vmem:[%s1259_s0 + $0x8] sm:$0xff]  ;;  %v869_v2 = vld [vmem:[%s1259_s0 + $0x10] sm:$0xff] }
   0x2   :  { %v874_v3 = vld [vmem:[%s1259_s0 + $0x18] sm:$0xff]  ;;  %v879_v4 = vld [vmem:[%s1259_s0 + $0x20] sm:$0xff]  ;;  %v884_v5 = vld [vmem:[%s1259_s0 + $0x28] sm:$0xff]  ;;  %v72_v6 = vrot.slane %v859_v0, 7  ;;  %v73_v7 = vrot.slane %v864_v1, 7  ;;  %v74_v8 = vrot.slane %v869_v2, 7 }
   0x3   :  { %v892_v9 = vld [vmem:[%s1259_s0 + $0x30] sm:$0xff]  ;;  %v897_v10 = vld [vmem:[%s1259_s0 + $0x38] sm:$0xff]  ;;  %v902_v11 = vld [vmem:[%s1260_s1] sm:$0xff]  ;;  %v75_v12 = vrot.slane %v874_v3, 7  ;;  %v76_v13 = vrot.slane %v879_v4, 7  ;;  %v77_v14 = vrot.slane %v884_v5, 7 }
   0x4   :  { %v910_v16 = vld [vmem:[%s1260_s1 + $0x8] sm:$0xff]  ;;  %v78_v17 = vrot.slane %v892_v9, 7  ;;  %v79_v18 = vrot.slane %v897_v10, 7  ;;  %v80_v19 = vsub.f32 %v859_v0, %v72_v6  ;;  %v81_v20 = vsub.f32 %v864_v1, %v73_v7  ;;  %v919_v21 = vld [vmem:[%s1260_s1 + $0x10] sm:$0xff]  ;;  %v924_v22 = vld [vmem:[%s1260_s1 + $0x18] sm:$0xff] }
   0x5   :  { %v82_v23 = vsub.f32 %v869_v2, %v74_v8  ;;  %v83_v24 = vsub.f32 %v874_v3, %v75_v12  ;;  %v84_v25 = vsub.f32 %v879_v4, %v76_v13  ;;  %v85_v26 = vsub.f32 %v884_v5, %v77_v14  ;;  %v933_v27 = vld [vmem:[%s1260_s1 + $0x20] sm:$0xff]  ;;  %v938_v28 = vld [vmem:[%s1260_s1 + $0x28] sm:$0xff] }
   0x6   :  { %v86_v29 = vsub.f32 %v892_v9, %v78_v17  ;;  %v87_v30 = vsub.f32 %v897_v10, %v79_v18  ;;  %v88_v31 = vrot.slane %v902_v11, 7  ;;  %v89_v32 = vrot.slane %v910_v16, 7 }
   0x7   :  { %10 = vsyncpa [#allocation7], 0  ;;  %v947_v33 = vld [vmem:[%s1260_s1 + $0x30] sm:$0xff]  ;;  %v952_v34 = vld [vmem:[%s1260_s1 + $0x38] sm:$0xff]  ;;  %v90_v35 = vrot.slane %v919_v21, 7  ;;  %v91_v36 = vrot.slane %v924_v22, 7 }
   0x8   :  { %v92_v37 = vrot.slane %v933_v27, 7  ;;  %v93_v38 = vrot.slane %v938_v28, 7  ;;  %v94_v39 = vrot.slane %v947_v33, 7  ;;  %v95_v40 = vrot.slane %v952_v34, 7  ;;  %s834_s19 = smov [#allocation4]  }
   0x9   :  { %v96_v41 = vsub.f32 %v902_v11, %v88_v31  ;;  %v97_v42 = vsub.f32 %v910_v16, %v89_v32  ;;  %v98_v43 = vsub.f32 %v919_v21, %v90_v35  ;;  %v99_v44 = vsub.f32 %v924_v22, %v91_v36  ;;  %s744_s20 = sshll.u32 %s834_s19, 4  ;;  %s745_s20 = int_to_ptr.vmem [resolvable:$true] %s744_s20 }
   0xa   :  { %v100_v45 = vsub.f32 %v933_v27, %v92_v37  ;;  %v101_v46 = vsub.f32 %v938_v28, %v93_v38  ;;  %v102_v47 = vsub.f32 %v947_v33, %v94_v39  ;;  %v103_v48 = vsub.f32 %v952_v34, %v95_v40  ;;  %s788_s21 = scalar_lea.vmem %s745_s20, 16  ;;  %s792_s22 = scalar_lea.vmem %s745_s20, 32 }
   0xb   :  { %v104_v49 = vmul.f32 %v96_v41, %v80_v19  ;;  %v105_v50 = vmul.f32 %v97_v42, %v81_v20  ;;  %v106_v51 = vmul.f32 %v98_v43, %v82_v23  ;;  %v107_v52 = vmul.f32 %v99_v44, %v83_v24  ;;  %p789_p0 = scmp.ne.s32.totalorder %s745_s20, %s788_s21  ;;  %p793_p1 = scmp.lt.s32.totalorder %s745_s20, %s745_s20 }
   0xc   :  { %v108_v53 = vmul.f32 %v100_v45, %v84_v25  ;;  %v109_v54 = vmul.f32 %v101_v46, %v85_v26  ;;  %v110_v55 = vmul.f32 %v102_v47, %v86_v29  ;;  %v111_v56 = vmul.f32 %v103_v48, %v87_v30  ;;  %p794_p2 = scmp.lt.s32.totalorder %s792_s22, %s788_s21 }
   0xd   :  { %v112_v57 = vsub.f32 1.0, %v104_v49  ;;  %v113_v58 = vsub.f32 1.0, %v105_v50  ;;  %v114_v59 = vsub.f32 1.0, %v106_v51  ;;  %v115_v60 = vsub.f32 1.0, %v107_v52 }
   0xe   :  { %v116_v61 = vsub.f32 1.0, %v108_v53  ;;  %v117_v62 = vsub.f32 1.0, %v109_v54  ;;  %v118_v63 = vsub.f32 1.0, %v110_v55  ;;  %v119_v6 = vsub.f32 1.0, %v111_v56  ;;  %p795_p3 = por %p794_p2, %p793_p1 }
   0xf   :  { %v968_v7 = vmax.f32 %v112_v57, 0.0  ;;  %v970_v8 = vmax.f32 %v113_v58, 0.0  ;;  %v972_v12 = vmax.f32 %v114_v59, 0.0  ;;  %v974_v13 = vmax.f32 %v115_v60, 0.0 }
  0x10   :  { %v976_v14 = vmax.f32 %v116_v61, 0.0  ;;  %v978_v17 = vmax.f32 %v117_v62, 0.0  ;;  %v980_v18 = vmax.f32 %v118_v63, 0.0  ;;  %v982_v19 = vmax.f32 %v119_v6, 0.0  ;;  %p796_p4 = pnand %p795_p3, %p789_p0 }
  0x11   :  { %v136_v20 = vrot.slane %v859_v0, 6  ;;  %v137_v23 = vrot.slane %v864_v1, 6  ;;  %v138_v24 = vrot.slane %v869_v2, 6  ;;  %v139_v25 = vrot.slane %v874_v3, 6 }
  0x12   :  { %v140_v26 = vrot.slane %v879_v4, 6  ;;  %v141_v29 = vrot.slane %v884_v5, 6  ;;  %v142_v30 = vrot.slane %v892_v9, 6  ;;  %v143_v31 = vrot.slane %v897_v10, 6 }
  0x13   :  { %v144_v32 = vsub.f32 %v859_v0, %v136_v20  ;;  %v145_v35 = vsub.f32 %v864_v1, %v137_v23  ;;  %v146_v36 = vsub.f32 %v869_v2, %v138_v24  ;;  %v147_v37 = vsub.f32 %v874_v3, %v139_v25 }
  0x14   :  { %v148_v38 = vsub.f32 %v879_v4, %v140_v26  ;;  %v149_v39 = vsub.f32 %v884_v5, %v141_v29  ;;  %v150_v40 = vsub.f32 %v892_v9, %v142_v30  ;;  %v151_v41 = vsub.f32 %v897_v10, %v143_v31 }
  0x15   :  { %v152_v42 = vrot.slane %v902_v11, 6  ;;  %v153_v43 = vrot.slane %v910_v16, 6  ;;  %v154_v44 = vrot.slane %v919_v21, 6  ;;  %v155_v45 = vrot.slane %v924_v22, 6 }
  0x16   :  { %v156_v46 = vrot.slane %v933_v27, 6  ;;  %v157_v47 = vrot.slane %v938_v28, 6  ;;  %v158_v48 = vrot.slane %v947_v33, 6  ;;  %v159_v49 = vrot.slane %v952_v34, 6 }
  0x17   :  { %v160_v50 = vsub.f32 %v902_v11, %v152_v42  ;;  %v161_v51 = vsub.f32 %v910_v16, %v153_v43  ;;  %v162_v52 = vsub.f32 %v919_v21, %v154_v44  ;;  %v163_v53 = vsub.f32 %v924_v22, %v155_v45 }
  0x18   :  { %v164_v54 = vsub.f32 %v933_v27, %v156_v46  ;;  %v165_v55 = vsub.f32 %v938_v28, %v157_v47  ;;  %v166_v56 = vsub.f32 %v947_v33, %v158_v48  ;;  %v167_v57 = vsub.f32 %v952_v34, %v159_v49 }
  0x19   :  { %v168_v58 = vmul.f32 %v160_v50, %v144_v32  ;;  %v169_v59 = vmul.f32 %v161_v51, %v145_v35  ;;  %v170_v60 = vmul.f32 %v162_v52, %v146_v36  ;;  %v171_v61 = vmul.f32 %v163_v53, %v147_v37 }
  0x1a   :  { %v172_v62 = vmul.f32 %v164_v54, %v148_v38  ;;  %v173_v63 = vmul.f32 %v165_v55, %v149_v39  ;;  %v174_v6 = vmul.f32 %v166_v56, %v150_v40  ;;  %v175_v20 = vmul.f32 %v167_v57, %v151_v41 }
  0x1b   :  { %v176_v23 = vsub.f32 1.0, %v168_v58  ;;  %v177_v24 = vsub.f32 1.0, %v169_v59  ;;  %v178_v25 = vsub.f32 1.0, %v170_v60  ;;  %v179_v26 = vsub.f32 1.0, %v171_v61 }
  0x1c   :  { %v180_v29 = vsub.f32 1.0, %v172_v62  ;;  %v181_v30 = vsub.f32 1.0, %v173_v63  ;;  %v182_v31 = vsub.f32 1.0, %v174_v6  ;;  %v183_v42 = vsub.f32 1.0, %v175_v20 }
  0x1d   :  { %v184_v43 = vmax.f32 %v176_v23, 0.0  ;;  %v185_v44 = vmax.f32 %v177_v24, 0.0  ;;  %v186_v45 = vmax.f32 %v178_v25, 0.0  ;;  %v187_v46 = vmax.f32 %v179_v26, 0.0 }
  0x1e   :  { %v188_v32 = vmax.f32 %v180_v29, 0.0  ;;  %v189_v35 = vmax.f32 %v181_v30, 0.0  ;;  %v190_v36 = vmax.f32 %v182_v31, 0.0  ;;  %v191_v37 = vmax.f32 %v183_v42, 0.0 }
  0x1f   :  { %v1017_v38 = vadd.f32 %v184_v43, %v968_v7  ;;  %v1020_v39 = vadd.f32 %v185_v44, %v970_v8  ;;  %v1023_v40 = vadd.f32 %v186_v45, %v972_v12  ;;  %v1026_v41 = vadd.f32 %v187_v46, %v974_v13 }
  0x20   :  { %v1029_v47 = vadd.f32 %v188_v32, %v976_v14  ;;  %v1032_v48 = vadd.f32 %v189_v35, %v978_v17  ;;  %v1035_v49 = vadd.f32 %v190_v36, %v980_v18  ;;  %v1038_v7 = vadd.f32 %v191_v37, %v982_v19 }
  0x21   :  { %v200_v8 = vrot.slane %v859_v0, 5  ;;  %v201_v12 = vrot.slane %v864_v1, 5  ;;  %v202_v50 = vrot.slane %v869_v2, 5  ;;  %v203_v13 = vrot.slane %v874_v3, 5 }
  0x22   :  { %v204_v14 = vrot.slane %v879_v4, 5  ;;  %v205_v51 = vrot.slane %v884_v5, 5  ;;  %v206_v17 = vrot.slane %v892_v9, 5  ;;  %v207_v18 = vrot.slane %v897_v10, 5 }
  0x23   :  { %v208_v52 = vsub.f32 %v859_v0, %v200_v8  ;;  %v209_v19 = vsub.f32 %v864_v1, %v201_v12  ;;  %v210_v53 = vsub.f32 %v869_v2, %v202_v50  ;;  %v211_v54 = vsub.f32 %v874_v3, %v203_v13 }
  0x24   :  { %v212_v55 = vsub.f32 %v879_v4, %v204_v14  ;;  %v213_v56 = vsub.f32 %v884_v5, %v205_v51  ;;  %v214_v57 = vsub.f32 %v892_v9, %v206_v17  ;;  %v215_v58 = vsub.f32 %v897_v10, %v207_v18 }
  0x25   :  { %v216_v59 = vrot.slane %v902_v11, 5  ;;  %v217_v60 = vrot.slane %v910_v16, 5  ;;  %v218_v61 = vrot.slane %v919_v21, 5  ;;  %v219_v62 = vrot.slane %v924_v22, 5 }
  0x26   :  { %v220_v63 = vrot.slane %v933_v27, 5  ;;  %v221_v6 = vrot.slane %v938_v28, 5  ;;  %v222_v20 = vrot.slane %v947_v33, 5  ;;  %v223_v23 = vrot.slane %v952_v34, 5 }
  0x27   :  { %v224_v24 = vsub.f32 %v902_v11, %v216_v59  ;;  %v225_v25 = vsub.f32 %v910_v16, %v217_v60  ;;  %v226_v26 = vsub.f32 %v919_v21, %v218_v61  ;;  %v227_v29 = vsub.f32 %v924_v22, %v219_v62 }
  0x28   :  { %v228_v30 = vsub.f32 %v933_v27, %v220_v63  ;;  %v229_v31 = vsub.f32 %v938_v28, %v221_v6  ;;  %vm264_vm0 = vcmask 31744   ;;  %v230_v42 = vsub.f32 %v947_v33, %v222_v20 }
  0x29   :  { %v231_v43 = vsub.f32 %v952_v34, %v223_v23  ;;  %v232_v44 = vmul.f32 %v224_v24, %v208_v52  ;;  %v233_v45 = vmul.f32 %v225_v25, %v209_v19  ;;  %v234_v46 = vmul.f32 %v226_v26, %v210_v53 }
  0x2a   :  { %v235_v32 = vmul.f32 %v227_v29, %v211_v54  ;;  %v236_v35 = vmul.f32 %v228_v30, %v212_v55  ;;  %v237_v36 = vmul.f32 %v229_v31, %v213_v56  ;;  %v238_v37 = vmul.f32 %v230_v42, %v214_v57 }
  0x2b   :  { %v239_v8 = vmul.f32 %v231_v43, %v215_v58  ;;  %v240_v12 = vsub.f32 1.0, %v232_v44  ;;  %v241_v50 = vsub.f32 1.0, %v233_v45  ;;  %v242_v13 = vsub.f32 1.0, %v234_v46 }
  0x2c   :  { %v243_v14 = vsub.f32 1.0, %v235_v32  ;;  %v244_v51 = vsub.f32 1.0, %v236_v35  ;;  %v245_v17 = vsub.f32 1.0, %v237_v36  ;;  %v246_v18 = vsub.f32 1.0, %v238_v37 }
  0x2d   :  { %v247_v59 = vsub.f32 1.0, %v239_v8  ;;  %v248_v60 = vmax.f32 %v240_v12, 0.0  ;;  %v249_v61 = vmax.f32 %v241_v50, 0.0  ;;  %v250_v62 = vmax.f32 %v242_v13, 0.0 }
  0x2e   :  { %v251_v63 = vmax.f32 %v243_v14, 0.0  ;;  %v252_v52 = vmax.f32 %v244_v51, 0.0  ;;  %v253_v19 = vmax.f32 %v245_v17, 0.0  ;;  %v254_v53 = vmax.f32 %v246_v18, 0.0 }
  0x2f   :  { %v255_v54 = vmax.f32 %v247_v59, 0.0  ;;  %v256_v55 = vadd.f32 %v248_v60, %v1017_v38  ;;  %v257_v56 = vadd.f32 %v249_v61, %v1020_v39  ;;  %v258_v57 = vadd.f32 %v250_v62, %v1023_v40 }
  0x30   :  { %v259_v58 = vadd.f32 %v251_v63, %v1026_v41  ;;  %v260_v6 = vadd.f32 %v252_v52, %v1029_v47  ;;  %v261_v20 = vadd.f32 %v253_v19, %v1032_v48  ;;  %v262_v23 = vadd.f32 %v254_v53, %v1035_v49 }
  0x31   :  { %v263_v24 = vadd.f32 %v255_v54, %v1038_v7  ;;  %v265_v25 = vsel %vm264_vm0, %v256_v55, 0.0  ;;  %v266_v26 = vsel %vm264_vm0, %v257_v56, 0.0  ;;  %v268_v38 = vsel %vm264_vm0, %v258_v57, 0.0 }
  0x32   :  { %v267_v29 = vadd.f32 %v266_v26, %v265_v25  ;;  %v270_v39 = vsel %vm264_vm0, %v259_v58, 0.0  ;;  %v272_v40 = vsel %vm264_vm0, %v260_v6, 0.0  ;;  %v274_v41 = vsel %vm264_vm0, %v261_v20, 0.0 }
  0x33   :  { %v276_v47 = vsel %vm264_vm0, %v262_v23, 0.0  ;;  %v278_v48 = vsel %vm264_vm0, %v263_v24, 0.0  ;;  %v290_v49 = vrot.slane %v859_v0, 4  ;;  %v291_v30 = vrot.slane %v864_v1, 4 }
  0x34   :  { %v269_v7 = vadd.f32 %v268_v38, %v267_v29  ;;  %v292_v31 = vrot.slane %v869_v2, 4  ;;  %v293_v42 = vrot.slane %v874_v3, 4  ;;  %v294_v43 = vrot.slane %v879_v4, 4 }
  0x35   :  { %v295_v44 = vrot.slane %v884_v5, 4  ;;  %v296_v45 = vrot.slane %v892_v9, 4  ;;  %v297_v46 = vrot.slane %v897_v10, 4  ;;  %v298_v35 = vsub.f32 %v859_v0, %v290_v49 }
  0x36   :  { %v271_v32 = vadd.f32 %v270_v39, %v269_v7  ;;  %v299_v36 = vsub.f32 %v864_v1, %v291_v30  ;;  %v300_v37 = vsub.f32 %v869_v2, %v292_v31  ;;  %v301_v8 = vsub.f32 %v874_v3, %v293_v42 }
  0x37   :  { %v302_v12 = vsub.f32 %v879_v4, %v294_v43  ;;  %v303_v50 = vsub.f32 %v884_v5, %v295_v44  ;;  %v304_v13 = vsub.f32 %v892_v9, %v296_v45  ;;  %v305_v51 = vsub.f32 %v897_v10, %v297_v46 }
  0x38   :  { %v273_v14 = vadd.f32 %v272_v40, %v271_v32  ;;  %v306_v17 = vrot.slane %v902_v11, 4  ;;  %v307_v18 = vrot.slane %v910_v16, 4  ;;  %v308_v59 = vrot.slane %v919_v21, 4 }
  0x39   :  { %v309_v60 = vrot.slane %v924_v22, 4  ;;  %v310_v61 = vrot.slane %v933_v27, 4  ;;  %v311_v62 = vrot.slane %v938_v28, 4  ;;  %v312_v52 = vrot.slane %v947_v33, 4 }
  0x3a   :  { %v275_v63 = vadd.f32 %v274_v41, %v273_v14  ;;  %v313_v19 = vrot.slane %v952_v34, 4  ;;  %v314_v53 = vsub.f32 %v902_v11, %v306_v17  ;;  %v315_v54 = vsub.f32 %v910_v16, %v307_v18 }
  0x3b   :  { %v316_v55 = vsub.f32 %v919_v21, %v308_v59  ;;  %v317_v56 = vsub.f32 %v924_v22, %v309_v60  ;;  %v318_v57 = vsub.f32 %v933_v27, %v310_v61  ;;  %v319_v6 = vsub.f32 %v938_v28, %v311_v62 }
  0x3c   :  { %v277_v58 = vadd.f32 %v276_v47, %v275_v63  ;;  %v320_v20 = vsub.f32 %v947_v33, %v312_v52  ;;  %v321_v23 = vsub.f32 %v952_v34, %v313_v19  ;;  %v322_v24 = vmul.f32 %v314_v53, %v298_v35 }
  0x3d   :  { %v323_v25 = vmul.f32 %v315_v54, %v299_v36  ;;  %v324_v26 = vmul.f32 %v316_v55, %v300_v37  ;;  %v325_v29 = vmul.f32 %v317_v56, %v301_v8  ;;  %v326_v39 = vmul.f32 %v318_v57, %v302_v12 }
  0x3e   :  { %v279_v38 = vadd.f32 %v278_v48, %v277_v58  ;;  %v327_v40 = vmul.f32 %v319_v6, %v303_v50  ;;  %v328_v41 = vmul.f32 %v320_v20, %v304_v13  ;;  %v329_v49 = vmul.f32 %v321_v23, %v305_v51 }
  0x3f   :  { %v330_v7 = vsub.f32 1.0, %v322_v24  ;;  %v331_v30 = vsub.f32 1.0, %v323_v25  ;;  %v332_v31 = vsub.f32 1.0, %v324_v26  ;;  %v333_v47 = vsub.f32 1.0, %v325_v29 }
  0x40   :  { %280 = vadd.xlane.f32.xlu0 %v279_v38  ;;  %v334_v42 = vsub.f32 1.0, %v326_v39  ;;  %v335_v43 = vsub.f32 1.0, %v327_v40  ;;  %v336_v44 = vsub.f32 1.0, %v328_v41  ;;  %v337_v45 = vsub.f32 1.0, %v329_v49 }
  0x41   :  { %v338_v46 = vmax.f32 %v330_v7, 0.0  ;;  %v339_v32 = vmax.f32 %v331_v30, 0.0  ;;  %v340_v35 = vmax.f32 %v332_v31, 0.0  ;;  %v341_v36 = vmax.f32 %v333_v47, 0.0 }
  0x42   :  { %v342_v37 = vmax.f32 %v334_v42, 0.0  ;;  %v343_v8 = vmax.f32 %v335_v43, 0.0  ;;  %v344_v48 = vmax.f32 %v336_v44, 0.0  ;;  %v345_v12 = vmax.f32 %v337_v45, 0.0 }
  0x43   :  { %v346_v50 = vsel %vm264_vm0, %v338_v46, 0.0  ;;  %v347_v13 = vsel %vm264_vm0, %v339_v32, 0.0  ;;  %v349_v14 = vsel %vm264_vm0, %v340_v35, 0.0  ;;  %v351_v17 = vsel %vm264_vm0, %v341_v36, 0.0 }
  0x44   :  { %v348_v51 = vadd.f32 %v347_v13, %v346_v50  ;;  %v353_v18 = vsel %vm264_vm0, %v342_v37, 0.0  ;;  %v355_v59 = vsel %vm264_vm0, %v343_v8, 0.0  ;;  %v357_v60 = vsel %vm264_vm0, %v344_v48, 0.0 }
  0x45   :  { %v359_v61 = vsel %vm264_vm0, %v345_v12, 0.0  ;;  %v1129_v62 = vshrl.u32 %v372_v15, 7  ;;  %v374_v63 = vsel %vm264_vm0, %v859_v0, -inf  ;;  %v381_v53 = vsel %vm264_vm0, %v864_v1, -inf }
  0x46   :  { %v350_v52 = vadd.f32 %v349_v14, %v348_v51  ;;  %v375_v19 = vrot.slane %v374_v63, 4  ;;  %v388_v54 = vsel %vm264_vm0, %v869_v2, -inf  ;;  %v382_v55 = vrot.slane %v381_v53, 4 }
  0x47   :  { %v389_v56 = vrot.slane %v388_v54, 4  ;;  %v395_v57 = vsel %vm264_vm0, %v874_v3, -inf  ;;  %v402_v15 = vsel %vm264_vm0, %v879_v4, -inf  ;;  %v409_v26 = vsel %vm264_vm0, %v884_v5, -inf }
  0x48   :  { %v352_v58 = vadd.f32 %v351_v17, %v350_v52  ;;  %v376_v6 = vmax.f32 %v374_v63, %v375_v19  ;;  %v396_v20 = vrot.slane %v395_v57, 4  ;;  %v403_v23 = vrot.slane %v402_v15, 4 }
  0x49   :  { %v383_v24 = vmax.f32 %v381_v53, %v382_v55  ;;  %v390_v25 = vmax.f32 %v388_v54, %v389_v56  ;;  %v416_v29 = vsel %vm264_vm0, %v892_v9, -inf  ;;  %v410_v30 = vrot.slane %v409_v26, 4 }
  0x4a   :  { %v354_v38 = vadd.f32 %v353_v18, %v352_v58  ;;  %v377_v39 = vrot.slane %v376_v6, 2  ;;  %v397_v40 = vmax.f32 %v395_v57, %v396_v20  ;;  %v404_v41 = vmax.f32 %v402_v15, %v403_v23 }
  0x4b   :  { %v384_v49 = vrot.slane %v383_v24, 2  ;;  %v391_v7 = vrot.slane %v390_v25, 2  ;;  %v417_v31 = vrot.slane %v416_v29, 4  ;;  %v411_v32 = vmax.f32 %v409_v26, %v410_v30 }
  0x4c   :  { %v356_v47 = vadd.f32 %v355_v59, %v354_v38  ;;  %v378_v42 = vmax.f32 %v376_v6, %v377_v39  ;;  %v398_v43 = vrot.slane %v397_v40, 2  ;;  %v405_v44 = vrot.slane %v404_v41, 2 }
  0x4d   :  { %v385_v45 = vmax.f32 %v383_v24, %v384_v49  ;;  %v392_v46 = vmax.f32 %v390_v25, %v391_v7  ;;  %v418_v35 = vmax.f32 %v416_v29, %v417_v31  ;;  %v412_v13 = vrot.slane %v411_v32, 2 }
  0x4e   :  { %v358_v36 = vadd.f32 %v357_v60, %v356_v47  ;;  %v379_v37 = vrot.slane %v378_v42, 1  ;;  %v399_v8 = vmax.f32 %v397_v40, %v398_v43  ;;  %v406_v48 = vmax.f32 %v404_v41, %v405_v44 }
  0x4f   :  { %v386_v12 = vrot.slane %v385_v45, 1  ;;  %v393_v50 = vrot.slane %v392_v46, 1  ;;  %v419_v14 = vrot.slane %v418_v35, 2  ;;  %v413_v19 = vmax.f32 %v411_v32, %v412_v13 }
  0x50   :  { %v360_v51 = vadd.f32 %v359_v61, %v358_v36  ;;  %v380_v17 = vmax.f32 %v378_v42, %v379_v37  ;;  %v400_v18 = vrot.slane %v399_v8, 1  ;;  %v407_v63 = vrot.slane %v406_v48, 1 }
  0x51   :  { %v387_v59 = vmax.f32 %v385_v45, %v386_v12  ;;  %v394_v52 = vmax.f32 %v392_v46, %v393_v50  ;;  %v420_v53 = vmax.f32 %v418_v35, %v419_v14  ;;  %v423_v60 = vsel %vm264_vm0, %v897_v10, -inf }
  0x52   :  { %361 = vadd.xlane.f32.xlu0 %v360_v51  ;;  %v401_v54 = vmax.f32 %v399_v8, %v400_v18  ;;  %v408_v55 = vmax.f32 %v406_v48, %v407_v63  ;;  %vm430_vm1 = vcmp.eq.f32.partialorder %v859_v0, %v380_v17  ;;  %v414_v56 = vrot.slane %v413_v19, 1 }
  0x53   :  { %v421_v57 = vrot.slane %v420_v53, 1  ;;  %v424_v15 = vrot.slane %v423_v60, 4  ;;  %vm431_vm2 = vcmp.eq.f32.partialorder %v864_v1, %v387_v59  ;;  %vm432_vm3 = vcmp.eq.f32.partialorder %v869_v2, %v394_v52 }
  0x54   :  { %vm433_vm4 = vcmp.eq.f32.partialorder %v874_v3, %v401_v54  ;;  %vm434_vm5 = vcmp.eq.f32.partialorder %v879_v4, %v408_v55  ;;  %v438_v61 = vsel %vm430_vm1, %v1129_v62, 8  ;;  %v415_v58 = vmax.f32 %v413_v19, %v414_v56 }
  0x55   :  { %v422_v6 = vmax.f32 %v420_v53, %v421_v57  ;;  %v425_v20 = vmax.f32 %v423_v60, %v424_v15  ;;  %v439_v23 = vsel %vm431_vm2, %v1129_v62, 8  ;;  %v440_v0 = vsel %vm432_vm3, %v1129_v62, 8 }
  0x56   :  { %v441_v24 = vsel %vm433_vm4, %v1129_v62, 8  ;;  %v442_v25 = vsel %vm434_vm5, %v1129_v62, 8  ;;  %v446_v1 = vsel %vm264_vm0, %v438_v61, 2147483647  ;;  %vm435_vm6 = vcmp.eq.f32.partialorder %v884_v5, %v415_v58 }
  0x57   :  { %v426_v2 = vrot.slane %v425_v20, 2  ;;  %vm436_vm7 = vcmp.eq.f32.partialorder %v892_v9, %v422_v6  ;;  %v447_v3 = vrot.slane %v446_v1, 4  ;;  %v443_v4 = vsel %vm435_vm6, %v1129_v62, 8 }
  0x58   :  { %v444_v26 = vsel %vm436_vm7, %v1129_v62, 8  ;;  %v456_v29 = vsel %vm264_vm0, %v439_v23, 2147483647  ;;  %v466_v38 = vsel %vm264_vm0, %v440_v0, 2147483647  ;;  %v526_v15 = vsel %vm264_vm0, %v902_v11, -inf }
  0x59   :  { %v427_v39 = vmax.f32 %v425_v20, %v426_v2  ;;  %vm448_vm8 = vcmp.lt.s32.totalorder %v446_v1, %v447_v3  ;;  %v457_v40 = vrot.slane %v456_v29, 4  ;;  %v467_v41 = vrot.slane %v466_v38, 4 }
  0x5a   :  { %v449_v49 = vsel %vm448_vm8, %v446_v1, %v447_v3  ;;  %v476_v7 = vsel %vm264_vm0, %v441_v24, 2147483647  ;;  %v486_v5 = vsel %vm264_vm0, %v442_v25, 2147483647  ;;  %v496_v9 = vsel %vm264_vm0, %v443_v4, 2147483647 }
  0x5b   :  { %v428_v30 = vrot.slane %v427_v39, 1  ;;  %v450_v31 = vrot.slane %v449_v49, 2  ;;  %vm458_vm9 = vcmp.lt.s32.totalorder %v456_v29, %v457_v40  ;;  %vm468_vm10 = vcmp.lt.s32.totalorder %v466_v38, %v467_v41 }
  0x5c   :  { %v459_v47 = vsel %vm458_vm9, %v456_v29, %v457_v40  ;;  %v469_v42 = vsel %vm468_vm10, %v466_v38, %v467_v41  ;;  %v477_v43 = vrot.slane %v476_v7, 4  ;;  %v487_v44 = vrot.slane %v486_v5, 4 }
  0x5d   :  { %v429_v45 = vmax.f32 %v427_v39, %v428_v30  ;;  %vm451_vm11 = vcmp.lt.s32.totalorder %v449_v49, %v450_v31  ;;  %v460_v46 = vrot.slane %v459_v47, 2  ;;  %v470_v32 = vrot.slane %v469_v42, 2 }
  0x5e   :  { %v452_v35 = vsel %vm451_vm11, %v449_v49, %v450_v31  ;;  %vm478_vm12 = vcmp.lt.s32.totalorder %v476_v7, %v477_v43  ;;  %vm488_vm13 = vcmp.lt.s32.totalorder %v486_v5, %v487_v44  ;;  %v497_v36 = vrot.slane %v496_v9, 4 }
  0x5f   :  { %vm437_vm14 = vcmp.eq.f32.partialorder %v897_v10, %v429_v45  ;;  %v453_v37 = vrot.slane %v452_v35, 1  ;;  %vm461_vm15 = vcmp.lt.s32.totalorder %v459_v47, %v460_v46  ;;  %vm471_vm1 = vcmp.lt.s32.totalorder %v469_v42, %v470_v32 }
  0x60   :  { %v445_v8 = vsel %vm437_vm14, %v1129_v62, 8  ;;  %v462_v48 = vsel %vm461_vm15, %v459_v47, %v460_v46  ;;  %v472_v12 = vsel %vm471_vm1, %v469_v42, %v470_v32  ;;  %v479_v50 = vsel %vm478_vm12, %v476_v7, %v477_v43 }
  0x61   :  { %vm454_vm2 = vcmp.lt.s32.totalorder %v452_v35, %v453_v37  ;;  %v463_v13 = vrot.slane %v462_v48, 1  ;;  %v473_v14 = vrot.slane %v472_v12, 1  ;;  %v480_v51 = vrot.slane %v479_v50, 2 }
  0x62   :  { %v1169_v17 = vsel %vm454_vm2, %v452_v35, %v453_v37  ;;  %v489_v18 = vsel %vm488_vm13, %v486_v5, %v487_v44  ;;  %vm498_vm3 = vcmp.lt.s32.totalorder %v496_v9, %v497_v36  ;;  %v506_v63 = vsel %vm264_vm0, %v444_v26, 2147483647 }
  0x63   :  { %vm464_vm4 = vcmp.lt.s32.totalorder %v462_v48, %v463_v13  ;;  %vm474_vm5 = vcmp.lt.s32.totalorder %v472_v12, %v473_v14  ;;  %vm481_vm6 = vcmp.lt.s32.totalorder %v479_v50, %v480_v51  ;;  %v490_v10 = vrot.slane %v489_v18, 2 }
  0x64   :  { %v1172_v59 = vsel %vm464_vm4, %v462_v48, %v463_v13  ;;  %v1174_v52 = vsel %vm474_vm5, %v472_v12, %v473_v14  ;;  %v482_v19 = vsel %vm481_vm6, %v479_v50, %v480_v51  ;;  %v499_v53 = vsel %vm498_vm3, %v496_v9, %v497_v36 }
  0x65   :  { %v483_v54 = vrot.slane %v482_v19, 1  ;;  %vm491_vm7 = vcmp.lt.s32.totalorder %v489_v18, %v490_v10  ;;  %v500_v55 = vrot.slane %v499_v53, 2  ;;  %v507_v60 = vrot.slane %v506_v63, 4 }
  0x66   :  { %v492_v56 = vsel %vm491_vm7, %v489_v18, %v490_v10  ;;  %v516_v57 = vsel %vm264_vm0, %v445_v8, 2147483647  ;;  %v533_v61 = vsel %vm264_vm0, %v910_v16, -inf  ;;  %v527_v1 = vrot.slane %v526_v15, 4 }
  0x67   :  { %vm484_vm8 = vcmp.lt.s32.totalorder %v482_v19, %v483_v54  ;;  %v493_v58 = vrot.slane %v492_v56, 1  ;;  %vm501_vm9 = vcmp.lt.s32.totalorder %v499_v53, %v500_v55  ;;  %vm508_vm10 = vcmp.lt.s32.totalorder %v506_v63, %v507_v60 }
  0x68   :  { %v1181_v6 = vsel %vm484_vm8, %v482_v19, %v483_v54  ;;  %v502_v20 = vsel %vm501_vm9, %v499_v53, %v500_v55  ;;  %v509_v23 = vsel %vm508_vm10, %v506_v63, %v507_v60  ;;  %v517_v0 = vrot.slane %v516_v57, 4 }
  0x69   :  { %vm494_vm11 = vcmp.lt.s32.totalorder %v492_v56, %v493_v58  ;;  %v503_v24 = vrot.slane %v502_v20, 1  ;;  %v510_v25 = vrot.slane %v509_v23, 2  ;;  %v534_v3 = vrot.slane %v533_v61, 4 }
  0x6a   :  { %v1183_v2 = vsel %vm494_vm11, %v492_v56, %v493_v58  ;;  %vm518_vm12 = vcmp.lt.s32.totalorder %v516_v57, %v517_v0  ;;  %v540_v4 = vsel %vm264_vm0, %v919_v21, -inf  ;;  %v528_v29 = vmax.f32 %v526_v15, %v527_v1 }
  0x6b   :  { %vm504_vm13 = vcmp.lt.s32.totalorder %v502_v20, %v503_v24  ;;  %vm511_vm14 = vcmp.lt.s32.totalorder %v509_v23, %v510_v25  ;;  %v519_v26 = vsel %vm518_vm12, %v516_v57, %v517_v0  ;;  %v535_v41 = vmax.f32 %v533_v61, %v534_v3 }
  0x6c   :  { %v1187_v38 = vsel %vm504_vm13, %v502_v20, %v503_v24  ;;  %v512_v39 = vsel %vm511_vm14, %v509_v23, %v510_v25  ;;  %v520_v40 = vrot.slane %v519_v26, 2  ;;  %v529_v7 = vrot.slane %v528_v29, 2 }
  0x6d   :  { %v513_v49 = vrot.slane %v512_v39, 1  ;;  %v541_v5 = vrot.slane %v540_v4, 4  ;;  %v547_v9 = vsel %vm264_vm0, %v924_v22, -inf  ;;  %v536_v30 = vrot.slane %v535_v41, 2 }
  0x6e   :  { %vm521_vm15 = vcmp.lt.s32.totalorder %v519_v26, %v520_v40  ;;  %v548_v31 = vrot.slane %v547_v9, 4  ;;  %v554_v47 = vsel %vm264_vm0, %v933_v27, -inf  ;;  %v530_v43 = vmax.f32 %v528_v29, %v529_v7 }
  0x6f   :  { %vm514_vm1 = vcmp.lt.s32.totalorder %v512_v39, %v513_v49  ;;  %v522_v42 = vsel %vm521_vm15, %v519_v26, %v520_v40  ;;  %v542_v44 = vmax.f32 %v540_v4, %v541_v5  ;;  %v537_v32 = vmax.f32 %v535_v41, %v536_v30 }
  0x70   :  { %v1193_v45 = vsel %vm514_vm1, %v512_v39, %v513_v49  ;;  %v523_v46 = vrot.slane %v522_v42, 1  ;;  %v549_v35 = vmax.f32 %v547_v9, %v548_v31  ;;  %v531_v36 = vrot.slane %v530_v43, 1 }
  0x71   :  { %v543_v37 = vrot.slane %v542_v44, 2  ;;  %v555_v8 = vrot.slane %v554_v47, 4  ;;  %v561_v48 = vsel %vm264_vm0, %v938_v28, -inf  ;;  %v538_v12 = vrot.slane %v537_v32, 1 }
  0x72   :  { %vm524_vm2 = vcmp.lt.s32.totalorder %v522_v42, %v523_v46  ;;  %v550_v50 = vrot.slane %v549_v35, 2  ;;  %v562_v13 = vrot.slane %v561_v48, 4  ;;  %v532_v51 = vmax.f32 %v530_v43, %v531_v36 }
  0x73   :  { %v1197_v14 = vsel %vm524_vm2, %v522_v42, %v523_v46  ;;  %v544_v18 = vmax.f32 %v542_v44, %v543_v37  ;;  %v556_v63 = vmax.f32 %v554_v47, %v555_v8  ;;  %v539_v10 = vmax.f32 %v537_v32, %v538_v12 }
  0x74   :  { %v551_v19 = vmax.f32 %v549_v35, %v550_v50  ;;  %v563_v53 = vmax.f32 %v561_v48, %v562_v13  ;;  %v568_v54 = vsel %vm264_vm0, %v947_v33, -inf  ;;  %v575_v57 = vsel %vm264_vm0, %v952_v34, -inf }
  0x75   :  { %v545_v55 = vrot.slane %v544_v18, 1  ;;  %v557_v60 = vrot.slane %v556_v63, 2  ;;  %v569_v56 = vrot.slane %v568_v54, 4  ;;  %v576_v58 = vrot.slane %v575_v57, 4 }
  0x76   :  { %v552_v15 = vrot.slane %v551_v19, 1  ;;  %v564_v61 = vrot.slane %v563_v53, 2  ;;  %vm582_vm3 = vcmp.eq.f32.partialorder %v902_v11, %v532_v51  ;;  %vm583_vm4 = vcmp.eq.f32.partialorder %v910_v16, %v539_v10 }
  0x77   :  { %v546_v20 = vmax.f32 %v544_v18, %v545_v55  ;;  %v558_v23 = vmax.f32 %v556_v63, %v557_v60  ;;  %v570_v0 = vmax.f32 %v568_v54, %v569_v56  ;;  %v577_v1 = vmax.f32 %v575_v57, %v576_v58 }
  0x78   :  { %v553_v24 = vmax.f32 %v551_v19, %v552_v15  ;;  %v565_v25 = vmax.f32 %v563_v53, %v564_v61  ;;  %v590_v3 = vsel %vm582_vm3, %v1129_v62, 8  ;;  %v591_v29 = vsel %vm583_vm4, %v1129_v62, 8 }
  0x79   :  { %v559_v4 = vrot.slane %v558_v23, 1  ;;  %v571_v26 = vrot.slane %v570_v0, 2  ;;  %vm584_vm5 = vcmp.eq.f32.partialorder %v919_v21, %v546_v20  ;;  %v578_v40 = vrot.slane %v577_v1, 2 }
  0x7a   :  { %v566_v39 = vrot.slane %v565_v25, 1  ;;  %vm585_vm6 = vcmp.eq.f32.partialorder %v924_v22, %v553_v24  ;;  %v592_v11 = vsel %vm584_vm5, %v1129_v62, 8  ;;  %v598_v7 = vsel %vm264_vm0, %v590_v3, 2147483647 }
  0x7b   :  { %v560_v41 = vmax.f32 %v558_v23, %v559_v4  ;;  %v572_v49 = vmax.f32 %v570_v0, %v571_v26  ;;  %v593_v16 = vsel %vm585_vm6, %v1129_v62, 8  ;;  %v579_v9 = vmax.f32 %v577_v1, %v578_v40 }
  0x7c   :  { %v567_v5 = vmax.f32 %v565_v25, %v566_v39  ;;  %v599_v30 = vrot.slane %v598_v7, 4  ;;  %v608_v31 = vsel %vm264_vm0, %v591_v29, 2147483647  ;;  %v618_v42 = vsel %vm264_vm0, %v592_v11, 2147483647 }
  0x7d   :  { %v573_v21 = vrot.slane %v572_v49, 1  ;;  %vm586_vm7 = vcmp.eq.f32.partialorder %v933_v27, %v560_v41  ;;  %v609_v47 = vrot.slane %v608_v31, 4  ;;  %v580_v22 = vrot.slane %v579_v9, 1 }
  0x7e   :  { %vm587_vm8 = vcmp.eq.f32.partialorder %v938_v28, %v567_v5  ;;  %v594_v43 = vsel %vm586_vm7, %v1129_v62, 8  ;;  %vm600_vm9 = vcmp.lt.s32.totalorder %v598_v7, %v599_v30  ;;  %v619_v8 = vrot.slane %v618_v42, 4 }
  0x7f   :  { %v574_v44 = vmax.f32 %v572_v49, %v573_v21  ;;  %v595_v46 = vsel %vm587_vm8, %v1129_v62, 8  ;;  %v601_v32 = vsel %vm600_vm9, %v598_v7, %v599_v30  ;;  %vm610_vm10 = vcmp.lt.s32.totalorder %v608_v31, %v609_v47 }
  0x80   :  { %v581_v35 = vmax.f32 %v579_v9, %v580_v22  ;;  %v602_v36 = vrot.slane %v601_v32, 2  ;;  %v611_v37 = vsel %vm610_vm10, %v608_v31, %v609_v47  ;;  %v628_v48 = vsel %vm264_vm0, %v593_v16, 2147483647 }
  0x81   :  { %vm588_vm11 = vcmp.eq.f32.partialorder %v947_v33, %v574_v44  ;;  %v612_v27 = vrot.slane %v611_v37, 2  ;;  %v638_v12 = vsel %vm264_vm0, %v594_v43, 2147483647  ;;  %vm620_vm14 = vcmp.lt.s32.totalorder %v618_v42, %v619_v8 }
  0x82   :  { %vm589_vm12 = vcmp.eq.f32.partialorder %v952_v34, %v581_v35  ;;  %v596_v28 = vsel %vm588_vm11, %v1129_v62, 8  ;;  %vm603_vm13 = vcmp.lt.s32.totalorder %v601_v32, %v602_v36  ;;  %v621_v51 = vsel %vm620_vm14, %v618_v42, %v619_v8 }
  0x83   :  { %v597_v50 = vsel %vm589_vm12, %v1129_v62, 8  ;;  %v604_v13 = vsel %vm603_vm13, %v601_v32, %v602_v36  ;;  %vm613_vm15 = vcmp.lt.s32.totalorder %v611_v37, %v612_v27  ;;  %v622_v10 = vrot.slane %v621_v51, 2 }
  0x84   :  { %v605_v18 = vrot.slane %v604_v13, 1  ;;  %v614_v63 = vsel %vm613_vm15, %v611_v37, %v612_v27  ;;  %v629_v33 = vrot.slane %v628_v48, 4  ;;  %v639_v53 = vrot.slane %v638_v12, 4 }
  0x85   :  { %v615_v19 = vrot.slane %v614_v63, 1  ;;  %v648_v54 = vsel %vm264_vm0, %v595_v46, 2147483647  ;;  %v658_v55 = vsel %vm264_vm0, %v596_v28, 2147483647  ;;  %vm623_vm2 = vcmp.lt.s32.totalorder %v621_v51, %v622_v10 }
  0x86   :  { %vm606_vm1 = vcmp.lt.s32.totalorder %v604_v13, %v605_v18  ;;  %vm630_vm3 = vcmp.lt.s32.totalorder %v628_v48, %v629_v33  ;;  %v649_v34 = vrot.slane %v648_v54, 4  ;;  %v624_v62 = vsel %vm623_vm2, %v621_v51, %v622_v10 }
  0x87   :  { %v607_v60 = vsel %vm606_vm1, %v604_v13, %v605_v18  ;;  %vm616_vm4 = vcmp.lt.s32.totalorder %v614_v63, %v615_v19  ;;  %v631_v56 = vsel %vm630_vm3, %v628_v48, %v629_v33  ;;  %v625_v15 = vrot.slane %v624_v62, 1 }
  0x88   :  { %v617_v57 = vsel %vm616_vm4, %v614_v63, %v615_v19  ;;  %v632_v61 = vrot.slane %v631_v56, 2  ;;  %vm640_vm5 = vcmp.lt.s32.totalorder %v638_v12, %v639_v53  ;;  %vm650_vm6 = vcmp.lt.s32.totalorder %v648_v54, %v649_v34 }
  0x89   :  { %v641_v58 = vsel %vm640_vm5, %v638_v12, %v639_v53  ;;  %v659_v20 = vrot.slane %v658_v55, 4  ;;  %v668_v23 = vsel %vm264_vm0, %v597_v50, 2147483647  ;;  %vm626_vm7 = vcmp.lt.s32.totalorder %v624_v62, %v625_v15 }
  0x8a   :  { %vm633_vm8 = vcmp.lt.s32.totalorder %v631_v56, %v632_v61  ;;  %v642_v0 = vrot.slane %v641_v58, 2  ;;  %v651_v24 = vsel %vm650_vm6, %v648_v54, %v649_v34  ;;  %v627_v25 = vsel %vm626_vm7, %v624_v62, %v625_v15 }
  0x8b   :  { %v634_v1 = vsel %vm633_vm8, %v631_v56, %v632_v61  ;;  %v652_v3 = vrot.slane %v651_v24, 2  ;;  %vm660_vm9 = vcmp.lt.s32.totalorder %v658_v55, %v659_v20  ;;  %v669_v29 = vrot.slane %v668_v23, 4 }
  0x8c   :  { %v635_v4 = vrot.slane %v634_v1, 1  ;;  %vm643_vm10 = vcmp.lt.s32.totalorder %v641_v58, %v642_v0  ;;  %v661_v26 = vsel %vm660_vm9, %v658_v55, %v659_v20  ;;  %vm678_vm12 = vcmp.eq.s32.totalorder %v1169_v17, %v607_v60 }
  0x8d   :  { %v644_v39 = vsel %vm643_vm10, %v641_v58, %v642_v0  ;;  %vm653_vm11 = vcmp.lt.s32.totalorder %v651_v24, %v652_v3  ;;  %v662_v40 = vrot.slane %v661_v26, 2  ;;  %vm670_vm14 = vcmp.lt.s32.totalorder %v668_v23, %v669_v29 }
  0x8e   :  { %vm636_vm13 = vcmp.lt.s32.totalorder %v634_v1, %v635_v4  ;;  %v645_v11 = vrot.slane %v644_v39, 1  ;;  %v654_v41 = vsel %vm653_vm11, %v651_v24, %v652_v3  ;;  %v671_v7 = vsel %vm670_vm14, %v668_v23, %v669_v29 }
  0x8f   :  { %v637_v49 = vsel %vm636_vm13, %v634_v1, %v635_v4  ;;  %v655_v16 = vrot.slane %v654_v41, 1  ;;  %vm663_vm15 = vcmp.lt.s32.totalorder %v661_v26, %v662_v40  ;;  %v672_v9 = vrot.slane %v671_v7, 2 }
  0x90   :  { %vm646_vm1 = vcmp.lt.s32.totalorder %v644_v39, %v645_v11  ;;  %v664_v5 = vsel %vm663_vm15, %v661_v26, %v662_v40  ;;  %vm679_vm2 = vcmp.eq.s32.totalorder %v1172_v59, %v617_v57  ;;  %vm680_vm4 = vcmp.eq.s32.totalorder %v1174_v52, %v627_v25 }
  0x91   :  { %v647_v30 = vsel %vm646_vm1, %v644_v39, %v645_v11  ;;  %vm656_vm3 = vcmp.lt.s32.totalorder %v654_v41, %v655_v16  ;;  %v665_v31 = vrot.slane %v664_v5, 1  ;;  %vm673_vm5 = vcmp.lt.s32.totalorder %v671_v7, %v672_v9 }
  0x92   :  { %v657_v21 = vsel %vm656_vm3, %v654_v41, %v655_v16  ;;  %vm681_vm6 = vcmp.eq.s32.totalorder %v1181_v6, %v637_v49  ;;  %vm682_vm7 = vcmp.eq.s32.totalorder %v1183_v2, %v647_v30  ;;  %v674_v47 = vsel %vm673_vm5, %v671_v7, %v672_v9 }
  0x93   :  { %vm666_vm8 = vcmp.lt.s32.totalorder %v664_v5, %v665_v31  ;;  %vm683_vm9 = vcmp.eq.s32.totalorder %v1187_v38, %v657_v21  ;;  %v832_v42 = vmov 0   ;;  %v675_v44 = vrot.slane %v674_v47, 1 }
  0x94   :  { %v686_v22 = vsel %vm678_vm12, 1, %v832_v42  ;;  %v667_v43 = vsel %vm666_vm8, %v664_v5, %v665_v31  ;;  %v687_v46 = vsel %vm679_vm2, 1, %v832_v42  ;;  %v688_v52 = vsel %vm680_vm4, 1, %v832_v42 }
  0x95   :  { %vm684_vm10 = vcmp.eq.s32.totalorder %v1193_v45, %v667_v43  ;;  %v689_v32 = vsel %vm681_vm6, 1, %v832_v42  ;;  %v690_v6 = vsel %vm682_vm7, 1, %v832_v42  ;;  %v691_v35 = vsel %vm683_vm9, 1, %v832_v42 }
  0x96   :  { %vm676_vm11 = vcmp.lt.s32.totalorder %v674_v47, %v675_v44  ;;  %v692_v2 = vsel %vm684_vm10, 1, %v832_v42  ;;  %v694_v36 = vsel %vm264_vm0, %v686_v22, 0  ;;  %v695_v38 = vsel %vm264_vm0, %v687_v46, 0 }
  0x97   :  { %v677_v37 = vsel %vm676_vm11, %v674_v47, %v675_v44  ;;  %v696_v17 = vsel %vm264_vm0, %v688_v52, 0  ;;  %v697_v8 = vsel %vm264_vm0, %v689_v32, 0  ;;  %v698_v59 = vsel %vm264_vm0, %v690_v6, 0 }
  0x98   :  { %vm685_vm12 = vcmp.eq.s32.totalorder %v1197_v14, %v677_v37  ;;  %v699_v27 = vadd.s32 %v698_v59, %v694_v36  ;;  %v700_v45 = vsel %vm264_vm0, %v691_v35, 0  ;;  %v702_v48 = vsel %vm264_vm0, %v692_v2, 0 }
  0x99   :  { %v693_v12 = vsel %vm685_vm12, 1, %v832_v42  ;;  %v701_v28 = vadd.s32 %v700_v45, %v695_v38  ;;  %v703_v50 = vadd.s32 %v702_v48, %v696_v17  ;;  %vm53_vm13 = vcmask 0  }
  0x9a   :  { %v704_v13 = vsel %vm264_vm0, %v693_v12, 0  ;;  %v833_v14 = vmov 0.0   ;;  %55 = vst.msk [vmem:[#allocation3] sm:$0x1] %vm53_vm13, %v832_v42 }
  0x9b   :  { %v705_v51 = vadd.s32 %v704_v13, %v697_v8  ;;  %v706_v18 = vadd.s32 %v701_v28, %v699_v27  ;;  %54 = vst.msk [vmem:[#allocation2] sm:$0x1] %vm53_vm13, %v833_v14 }
  0x9d   :  { %v707_v63 = vadd.s32 %v705_v51, %v703_v50 }
  0x9f   :  { %v708_v10 = vadd.s32 %v707_v63, %v706_v18 }
  0xa1   :  { %v710_v33 = vshrl.u32 %v708_v10, 16  ;;  %v709_v19 = vand.u32 65535, %v708_v10 }
  0xa2   :  { %v722_v1 = vld [vmem:[#allocation2] sm:$0x1] }
  0xa3   :  { %v712_v53 = vcvt.s32.f32 %v710_v33  ;;  %v711_v54 = vcvt.s32.f32 %v709_v19 }
  0xa5   :  { %715 = vadd.xlane.f32.xlu1 %v712_v53 }
  0xa9   :  { %713 = vadd.xlane.f32.xlu1 %v711_v54 }
  0xc9   :  { %v281_v55 = vpop.xlane.xlu0 %280 }
  0xca   :  { %v282_v34 = vrot.slane %v281_v55, 4 }
  0xcc   :  { %v283_v60 = vadd.f32 %v282_v34, %v281_v55 }
  0xce   :  { %v284_v62 = vrot.slane %v283_v60, 2 }
  0xd0   :  { %v285_v56 = vadd.f32 %v284_v62, %v283_v60 }
  0xd2   :  { %v286_v57 = vrot.slane %v285_v56, 1 }
  0xd4   :  { %v287_v15 = vadd.f32 %v286_v57, %v285_v56 }
  0xd6   :  { %778 = vpush %v287_v15 }
  0xdb   :  { %v362_v61 = vpop.xlane.xlu0 %361 }
  0xdc   :  { %v363_v58 = vrot.slane %v362_v61, 4 }
  0xde   :  { %v364_v20 = vadd.f32 %v363_v58, %v362_v61 }
  0xe0   :  { %v365_v23 = vrot.slane %v364_v20, 2 }
  0xe2   :  { %v366_v0 = vadd.f32 %v365_v23, %v364_v20 }
  0xe4   :  { %v367_v24 = vrot.slane %v366_v0, 1 }
  0xe6   :  { %v368_v25 = vadd.f32 %v367_v24, %v366_v0 }
  0xe8   :  { %780 = vpush %v368_v25 }
 0x107   :  { %s779_s1 = spop %778 }
 0x108   :  { %s289_s16 = smul.f32 2.0, %s779_s1 }
 0x119   :  { %s781_s17 = spop %780 }
 0x11a   :  { %s370_s18 = sadd.f32 %s781_s17, %s289_s16 }
 0x11c   :  { %v723_v3 = vstv %s370_s18 }
 0x11d   :  { %v724_v4 = vadd.f32 %v723_v3, %v722_v1 }
 0x11f   :  { %726 = vst.msk [vmem:[#allocation2] sm:$0x1] %vm53_vm13, %v724_v4 }
 0x126   :  { %v734_v26 = vld [vmem:[#allocation2] sm:$0x1] }
 0x127   :  { %735 = vst.msk [vmem:[#allocation4] sm:$0x1] %vm53_vm13, %v734_v26 }
 0x128   :  { %799 = shalt.err (!%p796_p4)
}
 0x129   :  { %747 = dma.vmem_to_hbm [thread:$0]  %s745_s20, 16, %s1261_s2, [#allocation5]   ;;  %v727_v16 = vld [vmem:[#allocation3] sm:$0x1] }
 0x12a   :  { %s835_s26 = smov [#allocation6]  }
 0x12b   :  { %s754_s27 = sshll.u32 %s835_s26, 4  ;;  %s755_s27 = int_to_ptr.vmem [resolvable:$true] %s754_s27 }
 0x12c   :  { %s808_s2 = scalar_lea.vmem %s755_s27, 16  ;;  %s812_s28 = scalar_lea.vmem %s755_s27, 32 }
 0x12d   :  { %p809_p5 = scmp.ne.s32.totalorder %s755_s27, %s808_s2  ;;  %p813_p6 = scmp.lt.s32.totalorder %s755_s27, %s755_s27 }
 0x12e   :  { %v716_v29 = vpop.xlane.xlu1 %715  ;;  %p814_p7 = scmp.lt.s32.totalorder %s812_s28, %s808_s2 }
 0x12f   :  { %v718_v39 = vcvt.f32.s32 %v716_v29 }
 0x130   :  { %p815_p8 = por %p814_p7, %p813_p6 }
 0x131   :  { %v719_v11 = vshll.u32 %v718_v39, 16 }
 0x132   :  { %v714_v40 = vpop.xlane.xlu1 %713  ;;  %p816_p9 = pnand %p815_p8, %p809_p5 }
 0x133   :  { %v717_v41 = vcvt.f32.s32 %v714_v40 }
 0x135   :  { %v720_v49 = vadd.s32 %v719_v11, %v717_v41 }
 0x137   :  { %782 = vpush %v720_v49 }
 0x168   :  { %s783_s25 = spop %782 }
 0x169   :  { %v728_v7 = vstv %s783_s25 }
 0x16a   :  { %v729_v5 = vadd.s32 %v728_v7, %v727_v16 }
 0x16c   :  { %730 = vst.msk [vmem:[#allocation3] sm:$0x1] %vm53_vm13, %v729_v5 }
 0x173   :  { %v736_v9 = vld [vmem:[#allocation3] sm:$0x1] }
 0x174   :  { %737 = vst.msk [vmem:[#allocation6] sm:$0x1] %vm53_vm13, %v736_v9 }
 0x175   :  { %819 = shalt.err (!%p816_p9)
}
 0x176   :  { %757 = dma.vmem_to_hbm [thread:$0]  %s755_s27, 16, %s1262_s3, [#allocation7]  }
 0x177   :  { %828 = dma.done.wait [#allocation5], 16  }
 0x178   :  { %829 = vsyncadd [#allocation5], 4294967280 }
 0x179   :  { %830 = dma.done.wait [#allocation7], 16  }
 0x17a   :  { %831 = vsyncadd [#allocation7], 4294967280 }
 0x17b   :  { %764 = vsyncpa [#allocation5], 1 }
 0x17c   :  { %765 = vsyncpa [#allocation7], 1 }

</bundles_post_ra>
